<compile_context>
chip_gen: v7x
topology: tpu7x:2x2x1
jax: 0.10.0
libtpu: 0.0.40
codegen_flags: <defaults>
</compile_context>

<pallas_src>
import jax
import jax.numpy as jnp
from jax.experimental import pallas as pl
from jax.experimental.pallas import tpu as pltpu

N_HIDDEN = 8      # number of hidden Linear layers (fc0..fc7)
HID = 10          # hidden width
B_INIT = -0.2     # bias init constant (matches the PyTorch module)

# TODO(synk): the batch_normalization=True branch (nn.BatchNorm1d) is not
# implemented; the module defaults to batch_normalization=False.


def mlp_kernel(xT_ref, w0_ref, b0_ref, w_ref, b_ref, wp_ref, bp_ref,
               outT_ref, pre_ref):
    # xT_ref:  (1, BN)                     -- batch on the lane axis
    # w0_ref:  (HID, 1), b0_ref: (HID, 1)  -- PyTorch (out, in) layout
    # w_ref:   (N_HIDDEN-1, HID, HID), b_ref: (N_HIDDEN-1, HID, 1)
    # wp_ref:  (HID, 1),  bp_ref: (1, 1)
    # outT_ref:(1, BN)
    # pre_ref: (N_HIDDEN, HID, BN)         -- pre-activation of each hidden layer
    xT = xT_ref[...]                                     # (1, BN), already f32

    # Layer 0 (1 -> HID): outer product on the VPU; a K=1 matmul would waste
    # an entire MXU pass.
    h = w0_ref[...] * xT + b0_ref[...]                   # (HID, BN)
    pre_ref[0] = h
    h = jnp.tanh(h)

    # Layers 1..N_HIDDEN-1 (HID -> HID), statically unrolled, lane-dense.
    for i in range(N_HIDDEN - 1):
        h = jnp.dot(w_ref[i], h,
                    preferred_element_type=jnp.float32) + b_ref[i]
        pre_ref[i + 1] = h
        h = jnp.tanh(h)

    # predict (HID -> 1): VPU multiply + sublane (XLU) reduce; an M=1 matmul
    # would waste another MXU pass and its fill/drain latency.
    outT_ref[...] = (jnp.sum(wp_ref[...] * h, axis=0, keepdims=True)
                     + bp_ref[...])


def net_forward(x, params, *, block_n=None):
    """Runs the Net forward pass. Returns (out, layer_input, pre_activation)
    with the same list structure as the PyTorch module.

    block_n=None (default) runs the whole batch in a single grid step. For
    large N, pass a block_n that is a multiple of 128 and divides N so the
    batch axis stays lane-dense and can shard across TensorCores (v7x)."""
    w0, b0, w, b, wp, bp = params
    N = x.shape[0]
    xT = x.T                                             # (1, N), lane-dense

    if block_n is None or block_n >= N:
        block_n = N
        grid = (1,)
    else:
        assert N % block_n == 0 and block_n % 128 == 0, (
            "block_n must divide N and be a multiple of 128 (lane axis)")
        grid = (N // block_n,)

    outT, preT = pl.pallas_call(
        mlp_kernel,
        out_shape=(
            jax.ShapeDtypeStruct((1, N), jnp.float32),
            jax.ShapeDtypeStruct((N_HIDDEN, HID, N), jnp.float32),
        ),
        grid_spec=pltpu.PrefetchScalarGridSpec(
            num_scalar_prefetch=0,
            grid=grid,
            in_specs=[
                pl.BlockSpec((1, block_n), lambda i: (0, i)),                # xT
                pl.BlockSpec((HID, 1), lambda i: (0, 0)),                    # w0
                pl.BlockSpec((HID, 1), lambda i: (0, 0)),                    # b0
                pl.BlockSpec((N_HIDDEN - 1, HID, HID), lambda i: (0, 0, 0)), # w
                pl.BlockSpec((N_HIDDEN - 1, HID, 1), lambda i: (0, 0, 0)),   # b
                pl.BlockSpec((HID, 1), lambda i: (0, 0)),                    # wp
                pl.BlockSpec((1, 1), lambda i: (0, 0)),                      # bp
            ],
            out_specs=[
                pl.BlockSpec((1, block_n), lambda i: (0, i)),                # outT
                pl.BlockSpec((N_HIDDEN, HID, block_n), lambda i: (0, 0, i)), # pre
            ],
        ),
        compiler_params=pltpu.CompilerParams(
            dimension_semantics=("parallel",)),
    )(xT, w0, b0, w, b, wp, bp)

    # Back to the PyTorch orientation; recompute tanh outside the kernel so
    # the kernel only writes the pre-activations (half the side-output bytes).
    out = outT.T                                         # (N, 1)
    pre_nf = jnp.transpose(preT, (0, 2, 1))              # (N_HIDDEN, N, HID)
    act_nf = jnp.tanh(pre_nf)

    #   pre_activation = [x, fc0(x), fc1(h0), ...]
    #   layer_input    = [x, tanh(fc0(x)), tanh(fc1(h0)), ...]
    pre_activation = [x] + [pre_nf[i] for i in range(N_HIDDEN)]
    layer_input = [x] + [act_nf[i] for i in range(N_HIDDEN)]
    return out, layer_input, pre_activation


def init_params(key):
    """Deterministic init matching the PyTorch module:
    weights ~ N(0, 0.1), biases = B_INIT. Weights stored (out, in) like
    nn.Linear, except `wp` which is stored as predict.weight.T = (HID, 1)."""
    ks = jax.random.split(key, N_HIDDEN + 1)
    w0 = (0.1 * jax.random.normal(ks[0], (HID, 1))).astype(jnp.float32)
    b0 = jnp.full((HID, 1), B_INIT, dtype=jnp.float32)
    w = jnp.stack([(0.1 * jax.random.normal(ks[i], (HID, HID))).astype(jnp.float32)
                   for i in range(1, N_HIDDEN)], axis=0)     # (7, HID_out, HID_in)
    b = jnp.full((N_HIDDEN - 1, HID, 1), B_INIT, dtype=jnp.float32)
    wp = (0.1 * jax.random.normal(ks[N_HIDDEN], (HID, 1))).astype(jnp.float32)
    bp = jnp.full((1, 1), B_INIT, dtype=jnp.float32)
    return w0, b0, w, b, wp, bp


def net_forward_ref(x, params):
    """Pure-JAX reference for correctness checking (same param convention)."""
    w0, b0, w, b, wp, bp = params
    p = x @ w0.T + b0.T                                   # (N, HID)
    h = jnp.tanh(p)
    pres, acts = [p], [h]
    for i in range(N_HIDDEN - 1):
        p = h @ w[i].T + b[i].T
        h = jnp.tanh(p)
        pres.append(p)
        acts.append(h)
    out = h @ wp + bp
    return out, [x] + acts, [x] + pres


if __name__ == "__main__":
    key = jax.random.PRNGKey(0)
    kx, kp = jax.random.split(key)

    # Small, deterministic input consistent with the module (features = 1).
    N = 16
    x = jnp.linspace(-7.0, 10.0, N, dtype=jnp.float32)[:, None]  # (16, 1)
    x = x + 0.0 * jax.random.normal(kx, x.shape)                 # deterministic key usage

    params = init_params(kp)

    out, layer_input, pre_activation = net_forward(x, params)
    jax.block_until_ready(out)
    jax.block_until_ready(layer_input[-1])
    jax.block_until_ready(pre_activation[-1])

    # Correctness check against a pure-JAX reference.
    out_r, li_r, pa_r = net_forward_ref(x, params)
    assert jnp.allclose(out, out_r, atol=1e-5, rtol=1e-5)
    for a, b_ in zip(layer_input, li_r):
        assert jnp.allclose(a, b_, atol=1e-5, rtol=1e-5)
    for a, b_ in zip(pre_activation, pa_r):
        assert jnp.allclose(a, b_, atol=1e-5, rtol=1e-5)

    print("KERNEL_OK")
</pallas_src>

<mosaic_0001>
module attributes {stable_mosaic.version = 11 : i64} {
  func.func @mlp_kernel(%arg0: i32, %arg1: memref<1x16xf32, #tpu.memory_space<vmem>>, %arg2: memref<10x1xf32, #tpu.memory_space<vmem>>, %arg3: memref<10x1xf32, #tpu.memory_space<vmem>>, %arg4: memref<7x10x10xf32, #tpu.memory_space<vmem>>, %arg5: memref<7x10x1xf32, #tpu.memory_space<vmem>>, %arg6: memref<10x1xf32, #tpu.memory_space<vmem>>, %arg7: memref<1x1xf32, #tpu.memory_space<vmem>>, %arg8: memref<1x16xf32, #tpu.memory_space<vmem>>, %arg9: memref<8x10x16xf32, #tpu.memory_space<vmem>>) attributes {dimension_semantics = [#tpu.dimension_semantics<parallel>], iteration_bounds = array<i64: 1>, scalar_prefetch = 0 : i64, scratch_operands = 0 : i64, tpu.core_type = #tpu.core_type<tc>, window_params = [{transform_indices = @transform_0, window_bounds = array<i64: 1, 16>}, {pipeline_mode = #tpu.pipeline_mode<synchronous>, transform_indices = @transform_1, window_bounds = array<i64: 10, 1>}, {pipeline_mode = #tpu.pipeline_mode<synchronous>, transform_indices = @transform_2, window_bounds = array<i64: 10, 1>}, {pipeline_mode = #tpu.pipeline_mode<synchronous>, transform_indices = @transform_3, window_bounds = array<i64: 7, 10, 10>}, {pipeline_mode = #tpu.pipeline_mode<synchronous>, transform_indices = @transform_4, window_bounds = array<i64: 7, 10, 1>}, {pipeline_mode = #tpu.pipeline_mode<synchronous>, transform_indices = @transform_5, window_bounds = array<i64: 10, 1>}, {pipeline_mode = #tpu.pipeline_mode<synchronous>, transform_indices = @transform_6, window_bounds = array<i64: 1, 1>}, {transform_indices = @transform_7, window_bounds = array<i64: 1, 16>}, {transform_indices = @transform_8, window_bounds = array<i64: 8, 10, 16>}]} {
    %c0 = arith.constant 0 : index
    %c0_0 = arith.constant 0 : index
    %0 = vector.load %arg1[%c0, %c0_0] : memref<1x16xf32, #tpu.memory_space<vmem>>, vector<1x16xf32>
    %c0_1 = arith.constant 0 : index
    %c0_2 = arith.constant 0 : index
    %1 = vector.load %arg2[%c0_1, %c0_2] : memref<10x1xf32, #tpu.memory_space<vmem>>, vector<10x1xf32>
    %2 = vector.broadcast %1 : vector<10x1xf32> to vector<10x16xf32>
    %3 = vector.broadcast %0 : vector<1x16xf32> to vector<10x16xf32>
    %4 = arith.mulf %2, %3 : vector<10x16xf32>
    %c0_3 = arith.constant 0 : index
    %c0_4 = arith.constant 0 : index
    %5 = vector.load %arg3[%c0_3, %c0_4] : memref<10x1xf32, #tpu.memory_space<vmem>>, vector<10x1xf32>
    %6 = vector.broadcast %5 : vector<10x1xf32> to vector<10x16xf32>
    %7 = arith.addf %4, %6 : vector<10x16xf32>
    %c0_5 = arith.constant 0 : index
    %c0_6 = arith.constant 0 : index
    %c0_7 = arith.constant 0 : index
    %8 = vector.load %arg9[%c0_5, %c0_6, %c0_7] : memref<8x10x16xf32, #tpu.memory_space<vmem>>, vector<1x10x16xf32>
    %9 = vector.shape_cast %8 : vector<1x10x16xf32> to vector<10x16xf32>
    %10 = vector.shape_cast %7 : vector<10x16xf32> to vector<1x10x16xf32>
    tpu.vector_store %arg9[%c0_5, %c0_6, %c0_7], %10 {strides = array<i32>} : memref<8x10x16xf32, #tpu.memory_space<vmem>>, vector<1x10x16xf32>,
    %11 = math.tanh %7 : vector<10x16xf32>
    %c0_8 = arith.constant 0 : index
    %c0_9 = arith.constant 0 : index
    %c0_10 = arith.constant 0 : index
    %12 = vector.load %arg4[%c0_8, %c0_9, %c0_10] : memref<7x10x10xf32, #tpu.memory_space<vmem>>, vector<1x10x10xf32>
    %13 = vector.shape_cast %12 : vector<1x10x10xf32> to vector<10x10xf32>
    %cst = arith.constant dense<0.000000e+00> : vector<10x16xf32>
    %14 = tpu.matmul %13, %11, %cst {dimension_numbers = #tpu.dot_dimension_numbers<[1], [0], [0], [1], [0, 0, 1, 1], [], []>} : vector<10x10xf32>, vector<10x16xf32>, vector<10x16xf32> -> vector<10x16xf32>
    %c0_11 = arith.constant 0 : index
    %c0_12 = arith.constant 0 : index
    %c0_13 = arith.constant 0 : index
    %15 = vector.load %arg5[%c0_11, %c0_12, %c0_13] : memref<7x10x1xf32, #tpu.memory_space<vmem>>, vector<1x10x1xf32>
    %16 = vector.shape_cast %15 : vector<1x10x1xf32> to vector<10x1xf32>
    %17 = vector.broadcast %16 : vector<10x1xf32> to vector<10x16xf32>
    %18 = arith.addf %14, %17 : vector<10x16xf32>
    %c1 = arith.constant 1 : index
    %c0_14 = arith.constant 0 : index
    %c0_15 = arith.constant 0 : index
    %19 = vector.load %arg9[%c1, %c0_14, %c0_15] : memref<8x10x16xf32, #tpu.memory_space<vmem>>, vector<1x10x16xf32>
    %20 = vector.shape_cast %19 : vector<1x10x16xf32> to vector<10x16xf32>
    %21 = vector.shape_cast %18 : vector<10x16xf32> to vector<1x10x16xf32>
    tpu.vector_store %arg9[%c1, %c0_14, %c0_15], %21 {strides = array<i32>} : memref<8x10x16xf32, #tpu.memory_space<vmem>>, vector<1x10x16xf32>,
    %22 = math.tanh %18 : vector<10x16xf32>
    %c1_16 = arith.constant 1 : index
    %c0_17 = arith.constant 0 : index
    %c0_18 = arith.constant 0 : index
    %23 = vector.load %arg4[%c1_16, %c0_17, %c0_18] : memref<7x10x10xf32, #tpu.memory_space<vmem>>, vector<1x10x10xf32>
    %24 = vector.shape_cast %23 : vector<1x10x10xf32> to vector<10x10xf32>
    %cst_19 = arith.constant dense<0.000000e+00> : vector<10x16xf32>
    %25 = tpu.matmul %24, %22, %cst_19 {dimension_numbers = #tpu.dot_dimension_numbers<[1], [0], [0], [1], [0, 0, 1, 1], [], []>} : vector<10x10xf32>, vector<10x16xf32>, vector<10x16xf32> -> vector<10x16xf32>
    %c1_20 = arith.constant 1 : index
    %c0_21 = arith.constant 0 : index
    %c0_22 = arith.constant 0 : index
    %26 = vector.load %arg5[%c1_20, %c0_21, %c0_22] : memref<7x10x1xf32, #tpu.memory_space<vmem>>, vector<1x10x1xf32>
    %27 = vector.shape_cast %26 : vector<1x10x1xf32> to vector<10x1xf32>
    %28 = vector.broadcast %27 : vector<10x1xf32> to vector<10x16xf32>
    %29 = arith.addf %25, %28 : vector<10x16xf32>
    %c2 = arith.constant 2 : index
    %c0_23 = arith.constant 0 : index
    %c0_24 = arith.constant 0 : index
    %30 = vector.load %arg9[%c2, %c0_23, %c0_24] : memref<8x10x16xf32, #tpu.memory_space<vmem>>, vector<1x10x16xf32>
    %31 = vector.shape_cast %30 : vector<1x10x16xf32> to vector<10x16xf32>
    %32 = vector.shape_cast %29 : vector<10x16xf32> to vector<1x10x16xf32>
    tpu.vector_store %arg9[%c2, %c0_23, %c0_24], %32 {strides = array<i32>} : memref<8x10x16xf32, #tpu.memory_space<vmem>>, vector<1x10x16xf32>,
    %33 = math.tanh %29 : vector<10x16xf32>
    %c2_25 = arith.constant 2 : index
    %c0_26 = arith.constant 0 : index
    %c0_27 = arith.constant 0 : index
    %34 = vector.load %arg4[%c2_25, %c0_26, %c0_27] : memref<7x10x10xf32, #tpu.memory_space<vmem>>, vector<1x10x10xf32>
    %35 = vector.shape_cast %34 : vector<1x10x10xf32> to vector<10x10xf32>
    %cst_28 = arith.constant dense<0.000000e+00> : vector<10x16xf32>
    %36 = tpu.matmul %35, %33, %cst_28 {dimension_numbers = #tpu.dot_dimension_numbers<[1], [0], [0], [1], [0, 0, 1, 1], [], []>} : vector<10x10xf32>, vector<10x16xf32>, vector<10x16xf32> -> vector<10x16xf32>
    %c2_29 = arith.constant 2 : index
    %c0_30 = arith.constant 0 : index
    %c0_31 = arith.constant 0 : index
    %37 = vector.load %arg5[%c2_29, %c0_30, %c0_31] : memref<7x10x1xf32, #tpu.memory_space<vmem>>, vector<1x10x1xf32>
    %38 = vector.shape_cast %37 : vector<1x10x1xf32> to vector<10x1xf32>
    %39 = vector.broadcast %38 : vector<10x1xf32> to vector<10x16xf32>
    %40 = arith.addf %36, %39 : vector<10x16xf32>
    %c3 = arith.constant 3 : index
    %c0_32 = arith.constant 0 : index
    %c0_33 = arith.constant 0 : index
    %41 = vector.load %arg9[%c3, %c0_32, %c0_33] : memref<8x10x16xf32, #tpu.memory_space<vmem>>, vector<1x10x16xf32>
    %42 = vector.shape_cast %41 : vector<1x10x16xf32> to vector<10x16xf32>
    %43 = vector.shape_cast %40 : vector<10x16xf32> to vector<1x10x16xf32>
    tpu.vector_store %arg9[%c3, %c0_32, %c0_33], %43 {strides = array<i32>} : memref<8x10x16xf32, #tpu.memory_space<vmem>>, vector<1x10x16xf32>,
    %44 = math.tanh %40 : vector<10x16xf32>
    %c3_34 = arith.constant 3 : index
    %c0_35 = arith.constant 0 : index
    %c0_36 = arith.constant 0 : index
    %45 = vector.load %arg4[%c3_34, %c0_35, %c0_36] : memref<7x10x10xf32, #tpu.memory_space<vmem>>, vector<1x10x10xf32>
    %46 = vector.shape_cast %45 : vector<1x10x10xf32> to vector<10x10xf32>
    %cst_37 = arith.constant dense<0.000000e+00> : vector<10x16xf32>
    %47 = tpu.matmul %46, %44, %cst_37 {dimension_numbers = #tpu.dot_dimension_numbers<[1], [0], [0], [1], [0, 0, 1, 1], [], []>} : vector<10x10xf32>, vector<10x16xf32>, vector<10x16xf32> -> vector<10x16xf32>
    %c3_38 = arith.constant 3 : index
    %c0_39 = arith.constant 0 : index
    %c0_40 = arith.constant 0 : index
    %48 = vector.load %arg5[%c3_38, %c0_39, %c0_40] : memref<7x10x1xf32, #tpu.memory_space<vmem>>, vector<1x10x1xf32>
    %49 = vector.shape_cast %48 : vector<1x10x1xf32> to vector<10x1xf32>
    %50 = vector.broadcast %49 : vector<10x1xf32> to vector<10x16xf32>
    %51 = arith.addf %47, %50 : vector<10x16xf32>
    %c4 = arith.constant 4 : index
    %c0_41 = arith.constant 0 : index
    %c0_42 = arith.constant 0 : index
    %52 = vector.load %arg9[%c4, %c0_41, %c0_42] : memref<8x10x16xf32, #tpu.memory_space<vmem>>, vector<1x10x16xf32>
    %53 = vector.shape_cast %52 : vector<1x10x16xf32> to vector<10x16xf32>
    %54 = vector.shape_cast %51 : vector<10x16xf32> to vector<1x10x16xf32>
    tpu.vector_store %arg9[%c4, %c0_41, %c0_42], %54 {strides = array<i32>} : memref<8x10x16xf32, #tpu.memory_space<vmem>>, vector<1x10x16xf32>,
    %55 = math.tanh %51 : vector<10x16xf32>
    %c4_43 = arith.constant 4 : index
    %c0_44 = arith.constant 0 : index
    %c0_45 = arith.constant 0 : index
    %56 = vector.load %arg4[%c4_43, %c0_44, %c0_45] : memref<7x10x10xf32, #tpu.memory_space<vmem>>, vector<1x10x10xf32>
    %57 = vector.shape_cast %56 : vector<1x10x10xf32> to vector<10x10xf32>
    %cst_46 = arith.constant dense<0.000000e+00> : vector<10x16xf32>
    %58 = tpu.matmul %57, %55, %cst_46 {dimension_numbers = #tpu.dot_dimension_numbers<[1], [0], [0], [1], [0, 0, 1, 1], [], []>} : vector<10x10xf32>, vector<10x16xf32>, vector<10x16xf32> -> vector<10x16xf32>
    %c4_47 = arith.constant 4 : index
    %c0_48 = arith.constant 0 : index
    %c0_49 = arith.constant 0 : index
    %59 = vector.load %arg5[%c4_47, %c0_48, %c0_49] : memref<7x10x1xf32, #tpu.memory_space<vmem>>, vector<1x10x1xf32>
    %60 = vector.shape_cast %59 : vector<1x10x1xf32> to vector<10x1xf32>
    %61 = vector.broadcast %60 : vector<10x1xf32> to vector<10x16xf32>
    %62 = arith.addf %58, %61 : vector<10x16xf32>
    %c5 = arith.constant 5 : index
    %c0_50 = arith.constant 0 : index
    %c0_51 = arith.constant 0 : index
    %63 = vector.load %arg9[%c5, %c0_50, %c0_51] : memref<8x10x16xf32, #tpu.memory_space<vmem>>, vector<1x10x16xf32>
    %64 = vector.shape_cast %63 : vector<1x10x16xf32> to vector<10x16xf32>
    %65 = vector.shape_cast %62 : vector<10x16xf32> to vector<1x10x16xf32>
    tpu.vector_store %arg9[%c5, %c0_50, %c0_51], %65 {strides = array<i32>} : memref<8x10x16xf32, #tpu.memory_space<vmem>>, vector<1x10x16xf32>,
    %66 = math.tanh %62 : vector<10x16xf32>
    %c5_52 = arith.constant 5 : index
    %c0_53 = arith.constant 0 : index
    %c0_54 = arith.constant 0 : index
    %67 = vector.load %arg4[%c5_52, %c0_53, %c0_54] : memref<7x10x10xf32, #tpu.memory_space<vmem>>, vector<1x10x10xf32>
    %68 = vector.shape_cast %67 : vector<1x10x10xf32> to vector<10x10xf32>
    %cst_55 = arith.constant dense<0.000000e+00> : vector<10x16xf32>
    %69 = tpu.matmul %68, %66, %cst_55 {dimension_numbers = #tpu.dot_dimension_numbers<[1], [0], [0], [1], [0, 0, 1, 1], [], []>} : vector<10x10xf32>, vector<10x16xf32>, vector<10x16xf32> -> vector<10x16xf32>
    %c5_56 = arith.constant 5 : index
    %c0_57 = arith.constant 0 : index
    %c0_58 = arith.constant 0 : index
    %70 = vector.load %arg5[%c5_56, %c0_57, %c0_58] : memref<7x10x1xf32, #tpu.memory_space<vmem>>, vector<1x10x1xf32>
    %71 = vector.shape_cast %70 : vector<1x10x1xf32> to vector<10x1xf32>
    %72 = vector.broadcast %71 : vector<10x1xf32> to vector<10x16xf32>
    %73 = arith.addf %69, %72 : vector<10x16xf32>
    %c6 = arith.constant 6 : index
    %c0_59 = arith.constant 0 : index
    %c0_60 = arith.constant 0 : index
    %74 = vector.load %arg9[%c6, %c0_59, %c0_60] : memref<8x10x16xf32, #tpu.memory_space<vmem>>, vector<1x10x16xf32>
    %75 = vector.shape_cast %74 : vector<1x10x16xf32> to vector<10x16xf32>
    %76 = vector.shape_cast %73 : vector<10x16xf32> to vector<1x10x16xf32>
    tpu.vector_store %arg9[%c6, %c0_59, %c0_60], %76 {strides = array<i32>} : memref<8x10x16xf32, #tpu.memory_space<vmem>>, vector<1x10x16xf32>,
    %77 = math.tanh %73 : vector<10x16xf32>
    %c6_61 = arith.constant 6 : index
    %c0_62 = arith.constant 0 : index
    %c0_63 = arith.constant 0 : index
    %78 = vector.load %arg4[%c6_61, %c0_62, %c0_63] : memref<7x10x10xf32, #tpu.memory_space<vmem>>, vector<1x10x10xf32>
    %79 = vector.shape_cast %78 : vector<1x10x10xf32> to vector<10x10xf32>
    %cst_64 = arith.constant dense<0.000000e+00> : vector<10x16xf32>
    %80 = tpu.matmul %79, %77, %cst_64 {dimension_numbers = #tpu.dot_dimension_numbers<[1], [0], [0], [1], [0, 0, 1, 1], [], []>} : vector<10x10xf32>, vector<10x16xf32>, vector<10x16xf32> -> vector<10x16xf32>
    %c6_65 = arith.constant 6 : index
    %c0_66 = arith.constant 0 : index
    %c0_67 = arith.constant 0 : index
    %81 = vector.load %arg5[%c6_65, %c0_66, %c0_67] : memref<7x10x1xf32, #tpu.memory_space<vmem>>, vector<1x10x1xf32>
    %82 = vector.shape_cast %81 : vector<1x10x1xf32> to vector<10x1xf32>
    %83 = vector.broadcast %82 : vector<10x1xf32> to vector<10x16xf32>
    %84 = arith.addf %80, %83 : vector<10x16xf32>
    %c7 = arith.constant 7 : index
    %c0_68 = arith.constant 0 : index
    %c0_69 = arith.constant 0 : index
    %85 = vector.load %arg9[%c7, %c0_68, %c0_69] : memref<8x10x16xf32, #tpu.memory_space<vmem>>, vector<1x10x16xf32>
    %86 = vector.shape_cast %85 : vector<1x10x16xf32> to vector<10x16xf32>
    %87 = vector.shape_cast %84 : vector<10x16xf32> to vector<1x10x16xf32>
    tpu.vector_store %arg9[%c7, %c0_68, %c0_69], %87 {strides = array<i32>} : memref<8x10x16xf32, #tpu.memory_space<vmem>>, vector<1x10x16xf32>,
    %88 = math.tanh %84 : vector<10x16xf32>
    %c0_70 = arith.constant 0 : index
    %c0_71 = arith.constant 0 : index
    %89 = vector.load %arg6[%c0_70, %c0_71] : memref<10x1xf32, #tpu.memory_space<vmem>>, vector<10x1xf32>
    %90 = vector.broadcast %89 : vector<10x1xf32> to vector<10x16xf32>
    %91 = arith.mulf %90, %88 : vector<10x16xf32>
    %cst_72 = arith.constant dense<0.000000e+00> : vector<16xf32>
    %92 = vector.multi_reduction <add>, %91, %cst_72 [0] : vector<10x16xf32> to vector<16xf32>
    %93 = vector.shape_cast %92 : vector<16xf32> to vector<1x16xf32>
    %c0_73 = arith.constant 0 : index
    %c0_74 = arith.constant 0 : index
    %94 = vector.load %arg7[%c0_73, %c0_74] : memref<1x1xf32, #tpu.memory_space<vmem>>, vector<1x1xf32>
    %95 = vector.broadcast %94 : vector<1x1xf32> to vector<1x16xf32>
    %96 = arith.addf %93, %95 : vector<1x16xf32>
    %c0_75 = arith.constant 0 : index
    %c0_76 = arith.constant 0 : index
    %97 = vector.load %arg8[%c0_75, %c0_76] : memref<1x16xf32, #tpu.memory_space<vmem>>, vector<1x16xf32>
    tpu.vector_store %arg8[%c0_75, %c0_76], %96 {strides = array<i32>} : memref<1x16xf32, #tpu.memory_space<vmem>>, vector<1x16xf32>,
    return
  }
  func.func @transform_0(%arg0: i32) -> (i32, i32) {
    %c0_i32 = arith.constant 0 : i32
    %c0_i32_0 = arith.constant 0 : i32
    return %c0_i32, %arg0 : i32, i32
  }
  func.func @transform_1(%arg0: i32) -> (i32, i32) {
    %c0_i32 = arith.constant 0 : i32
    %c0_i32_0 = arith.constant 0 : i32
    %c0_i32_1 = arith.constant 0 : i32
    return %c0_i32, %c0_i32_0 : i32, i32
  }
  func.func @transform_2(%arg0: i32) -> (i32, i32) {
    %c0_i32 = arith.constant 0 : i32
    %c0_i32_0 = arith.constant 0 : i32
    %c0_i32_1 = arith.constant 0 : i32
    return %c0_i32, %c0_i32_0 : i32, i32
  }
  func.func @transform_3(%arg0: i32) -> (i32, i32, i32) {
    %c0_i32 = arith.constant 0 : i32
    %c0_i32_0 = arith.constant 0 : i32
    %c0_i32_1 = arith.constant 0 : i32
    %c0_i32_2 = arith.constant 0 : i32
    return %c0_i32, %c0_i32_0, %c0_i32_1 : i32, i32, i32
  }
  func.func @transform_4(%arg0: i32) -> (i32, i32, i32) {
    %c0_i32 = arith.constant 0 : i32
    %c0_i32_0 = arith.constant 0 : i32
    %c0_i32_1 = arith.constant 0 : i32
    %c0_i32_2 = arith.constant 0 : i32
    return %c0_i32, %c0_i32_0, %c0_i32_1 : i32, i32, i32
  }
  func.func @transform_5(%arg0: i32) -> (i32, i32) {
    %c0_i32 = arith.constant 0 : i32
    %c0_i32_0 = arith.constant 0 : i32
    %c0_i32_1 = arith.constant 0 : i32
    return %c0_i32, %c0_i32_0 : i32, i32
  }
  func.func @transform_6(%arg0: i32) -> (i32, i32) {
    %c0_i32 = arith.constant 0 : i32
    %c0_i32_0 = arith.constant 0 : i32
    %c0_i32_1 = arith.constant 0 : i32
    return %c0_i32, %c0_i32_0 : i32, i32
  }
  func.func @transform_7(%arg0: i32) -> (i32, i32) {
    %c0_i32 = arith.constant 0 : i32
    %c0_i32_0 = arith.constant 0 : i32
    return %c0_i32, %arg0 : i32, i32
  }
  func.func @transform_8(%arg0: i32) -> (i32, i32, i32) {
    %c0_i32 = arith.constant 0 : i32
    %c0_i32_0 = arith.constant 0 : i32
    %c0_i32_1 = arith.constant 0 : i32
    return %c0_i32, %c0_i32_0, %arg0 : i32, i32, i32
  }
}

</mosaic_0001>

<bundles_post_ra>
// kernel: tpu_custom_call.1
= control target key start
LH: loop header
LB: loop body
LE: loop exit
PB: predicated region body
PF: predicated region fallthrough
CT: control target
= control target key end

     0   :  { %s1381_s0 = inlined_call_operand.vmem [shape: f32[1,16], index: 0, kind: input, shape index: {}]   ;;  %s1382_s1 = inlined_call_operand.vmem [shape: f32[10,1], index: 1, kind: input, shape index: {}]   ;;  %s1383_s2 = inlined_call_operand.vmem [shape: f32[10,1], index: 2, kind: input, shape index: {}]   ;;  %s1384_s3 = inlined_call_operand.vmem [shape: f32[7,10,10], index: 3, kind: input, shape index: {}]   ;;  %s1385_s4 = inlined_call_operand.vmem [shape: f32[7,10,1], index: 4, kind: input, shape index: {}]   ;;  %s1386_s5 = inlined_call_operand.vmem [shape: f32[10,1], index: 5, kind: input, shape index: {}]   ;;  %s1387_s6 = inlined_call_operand.<no memory space> [shape: f32[1,1], index: 6, kind: input, shape index: {}]   ;;  %s1388_s7 = inlined_call_operand.hbm [shape: f32[1,16], index: 7, kind: output, shape index: {0}]   ;;  %s1389_s8 = inlined_call_operand.vmem [shape: f32[8,10,16], index: 8, kind: output, shape index: {1}]  }
   0x1   :  { %v14_v0 = vstv %s1387_s6 }
   0x2   :  { %15 = vst [vmem:[#allocation2] sm:$0x1] %v14_v0 }
   0x3   :  { %v52_v1 = vld [vmem:[%s1383_s2] sm:$0xff]  ;;  %v1101_v3 = vmov 0   ;;  %v53_v4 = vld [vmem:[%s1383_s2 + $0x8] sm:$0x3] }
   0x4   :  { %v32_v2 = vld [vmem:[%s1382_s1] sm:$0xff]  ;;  %1044 = vset.pattern.permute.xlu1 %v1101_v3  ;;  %1043 = vset.pattern.permute.xlu0 %v1101_v3  ;;  %v33_v5 = vld [vmem:[%s1382_s1 + $0x8] sm:$0x3] }
   0x5   :  { %56 = vperm.xlu1 %1044, %v52_v1   ;;  %36 = vperm.xlu0 %1043, %v32_v2   ;;  %v75_v6 = vld [vmem:[%s1385_s4 + $0x8] sm:$0x3]  ;;  %v74_v7 = vld [vmem:[%s1385_s4] sm:$0xff] }
   0x9   :  { %61 = vperm.xlu1 %1044, %v53_v4   ;;  %41 = vperm.xlu0 %1043, %v33_v5  }
   0xa   :  { %16 = vsyncpa [#allocation4], 0  ;;  %v870_v8 = vld [vmem:[%s1385_s4 + $0x18] sm:$0x3]  ;;  %v869_v9 = vld [vmem:[%s1385_s4 + $0x10] sm:$0xff]  ;;  %vm86_vm0 = vcmask 80896  }
   0xb   :  { %v879_v10 = vld [vmem:[%s1385_s4 + $0x28] sm:$0x3]  ;;  %v878_v11 = vld [vmem:[%s1385_s4 + $0x20] sm:$0xff]  ;;  %v888_v12 = vld [vmem:[%s1385_s4 + $0x38] sm:$0x3]  ;;  %vm66_vm1 = vcmask 130048  }
   0xc   :  { %v887_v13 = vld [vmem:[%s1385_s4 + $0x30] sm:$0xff]  ;;  %v897_v14 = vld [vmem:[%s1385_s4 + $0x48] sm:$0x3]  ;;  %v896_v15 = vld [vmem:[%s1385_s4 + $0x40] sm:$0xff]  ;;  %vm68_vm2 = vcmask 123904   ;;  %vm93_vm3 = vcmask 1041408  }
   0xd   :  { %83 = vperm.xlu1 %1044, %v75_v6   ;;  %78 = vperm.xlu0 %1043, %v74_v7   ;;  %v72_v16 = vld [vmem:[%s1384_s3] sm:$0xff]  ;;  %v906_v17 = vld [vmem:[%s1385_s4 + $0x58] sm:$0x3]  ;;  %v905_v18 = vld [vmem:[%s1385_s4 + $0x50] sm:$0xff]  ;;  %vm1102_vm4 = vmmov 1   ;;  %vm841_vm6 = vcmask 122880  }
   0xe   :  { %953 = vmatprep.mubr.msk.f32.mxu0 %vm86_vm0, %v72_v16  ;;  %v915_v19 = vld [vmem:[%s1385_s4 + $0x68] sm:$0x3]  ;;  %v914_v20 = vld [vmem:[%s1385_s4 + $0x60] sm:$0xff]  ;;  %vm1227_vm5 = vmpackc.low %vm93_vm3, %vm1102_vm4 }
   0xf   :  { %v808_v21 = vld [vmem:[%s1386_s5 + $0x8] sm:$0x3]  ;;  %v807_v22 = vld [vmem:[%s1386_s5] sm:$0xff]  ;;  %v867_v38 = vld [vmem:[%s1384_s3 + $0x10] sm:$0xff] }
  0x10   :  { %v830_v23 = vld [vmem:[#allocation2] sm:$0x1]  ;;  %v73_v37 = vld [vmem:[%s1384_s3 + $0x8] sm:$0x3]  ;;  %960 = vmatprep.mubr.msk.f32.mxu1 %vm86_vm0, %v867_v38  ;;  %v868_v48 = vld [vmem:[%s1384_s3 + $0x18] sm:$0x3] }
  0x11   :  { %190 = vperm.xlu1 %1044, %v870_v8   ;;  %185 = vperm.xlu0 %1043, %v869_v9   ;;  %v861_v24 = vld [vmem:[%s1381_s0] ss:$0 sm:$0xff]  ;;  %v877_v59 = vld [vmem:[%s1384_s3 + $0x28] sm:$0x3]  ;;  %v885_v60 = vld [vmem:[%s1384_s3 + $0x30] sm:$0xff] }
  0x12   :  { %v876_v49 = vld [vmem:[%s1384_s3 + $0x20] sm:$0xff]  ;;  %v886_v6 = vld [vmem:[%s1384_s3 + $0x38] sm:$0x3] }
  0x13   :  { %v894_v7 = vld [vmem:[%s1384_s3 + $0x40] sm:$0xff] }
  0x15   :  { %295 = vperm.xlu1 %1044, %v879_v10   ;;  %290 = vperm.xlu0 %1043, %v878_v11  }
  0x19   :  { %400 = vperm.xlu1 %1044, %v888_v12   ;;  %395 = vperm.xlu0 %1043, %v887_v13  }
  0x1d   :  { %505 = vperm.xlu1 %1044, %v897_v14   ;;  %500 = vperm.xlu0 %1043, %v896_v15  }
  0x21   :  { %610 = vperm.xlu1 %1044, %v906_v17   ;;  %605 = vperm.xlu0 %1043, %v905_v18   ;;  %v895_v17 = vld [vmem:[%s1384_s3 + $0x48] sm:$0x3]  ;;  %v903_v18 = vld [vmem:[%s1384_s3 + $0x50] sm:$0xff] }
  0x25   :  { %715 = vperm.xlu1 %1044, %v915_v19   ;;  %710 = vperm.xlu0 %1043, %v914_v20  }
  0x29   :  { %816 = vperm.xlu1 %1044, %v808_v21   ;;  %811 = vperm.xlu0 %1043, %v807_v22  }
  0x2d   :  { %833 = vperm.xlu0 %1043, %v830_v23  }
  0x84   :  { %v57_v25 = vpop.permute.xlu1 %56  ;;  %v37_v26 = vpop.permute.xlu0 %36 }
  0x85   :  { %v50_v27 = vmul.f32 %v861_v24, %v37_v26 }
  0x87   :  { %v64_v28 = vadd.f32 %v57_v25, %v50_v27 }
  0x88   :  { %v42_v29 = vpop.permute.xlu0 %41  ;;  %v62_v31 = vpop.permute.xlu1 %61 }
  0x89   :  { %67 = vst.msk [vmem:[%s1389_s8] sm:$0xff] %vm66_vm1, %v64_v28  ;;  %v51_v30 = vmul.f32 %v861_v24, %v42_v29  ;;  %1045 = vtanh.f32 %v64_v28  ;;  %v904_v28 = vld [vmem:[%s1384_s3 + $0x58] sm:$0x3]  ;;  %v912_v29 = vld [vmem:[%s1384_s3 + $0x60] sm:$0xff] }
  0x8b   :  { %v65_v32 = vadd.f32 %v62_v31, %v51_v30 }
  0x8c   :  { %v84_v39 = vpop.permute.xlu1 %83  ;;  %v79_v41 = vpop.permute.xlu0 %78 }
  0x8d   :  { %69 = vst.msk [vmem:[%s1389_s8 + $0x8] sm:$0x3] %vm68_vm2, %v65_v32  ;;  %1047 = vtanh.f32 %v65_v32 }
  0x90   :  { %v191_v50 = vpop.permute.xlu1 %190  ;;  %v186_v52 = vpop.permute.xlu0 %185 }
  0x93   :  { %v1046_v33 = vpop.eup %1045 }
  0x94   :  { %v296_v61 = vpop.permute.xlu1 %295  ;;  %v291_v63 = vpop.permute.xlu0 %290 }
  0x97   :  { %v1048_v34 = vpop.eup %1047 }
  0x98   :  { %v998_v36 = vpack.c.bf16 %v1048_v34, %v1046_v33  ;;  %v401_v8 = vpop.permute.xlu1 %400  ;;  %v396_v10 = vpop.permute.xlu0 %395 }
  0x9a   :  { %1000 = vmatprep.subr.msk.bf16.mxu0 %vm1227_vm5, %v998_v36 }
  0x9b   :  { %1003 = vmatpush3.bf16.msk.msra.mxu0 %vm1227_vm5, %v998_v36 }
  0x9c   :  { %v506_v19 = vpop.permute.xlu1 %505  ;;  %v501_v21 = vpop.permute.xlu0 %500 }
  0x9e   :  { %954 = vmatmul.mubr.msk.f32.vlgmr.msra.gmra.mrb[0].mxu0 %vm86_vm0, %v73_v37 }
  0x9f   :  { %967 = vmatprep.mubr.msk.f32.mxu0 %vm86_vm0, %v876_v49 }
  0xa0   :  { %v611_v30 = vpop.permute.xlu1 %610  ;;  %v606_v32 = vpop.permute.xlu0 %605 }
 0x171   :  { %v955_v40 = vpop.f32.mrb[0].mxu0 }
 0x172   :  { %v169_v42 = vadd.f32 %v955_v40, %v84_v39  ;;  %v163_v43 = vpop.f32.mrb[1].mxu0  ;;  %v913_v40 = vld [vmem:[%s1384_s3 + $0x68] sm:$0x3]  ;;  %s1103_s3 = smov [#allocation3]  }
 0x173   :  { %v164_v44 = vadd.f32 %v163_v43, %v79_v41  ;;  %v716_v41 = vpop.permute.xlu1 %715  ;;  %v711_v43 = vpop.permute.xlu0 %710 }
 0x174   :  { %866 = vst.msk [vmem:[%s1389_s8 + $0x18] sm:$0x3] %vm68_vm2, %v169_v42  ;;  %1049 = vtanh.f32 %v169_v42 }
 0x175   :  { %865 = vst.msk [vmem:[%s1389_s8 + $0x10] sm:$0xff] %vm66_vm1, %v164_v44  ;;  %1051 = vtanh.f32 %v164_v44 }
 0x177   :  { %v812_v49 = vpop.permute.xlu0 %811 }
 0x17e   :  { %v1050_v45 = vpop.eup %1049 }
 0x17f   :  { %v1052_v46 = vpop.eup %1051 }
 0x180   :  { %v1004_v47 = vpack.c.bf16 %v1050_v45, %v1052_v46 }
 0x182   :  { %1006 = vmatprep.subr.msk.bf16.mxu1 %vm1227_vm5, %v1004_v47 }
 0x183   :  { %1009 = vmatpush3.bf16.msk.msra.mxu1 %vm1227_vm5, %v1004_v47  ;;  %v817_v47 = vpop.permute.xlu1 %816 }
 0x186   :  { %961 = vmatmul.mubr.msk.f32.vlgmr.msra.gmra.mrb[0].mxu1 %vm86_vm0, %v868_v48 }
 0x187   :  { %974 = vmatprep.mubr.msk.f32.mxu1 %vm86_vm0, %v885_v60 }
 0x259   :  { %v962_v51 = vpop.f32.mrb[0].mxu1 }
 0x25a   :  { %v274_v53 = vadd.f32 %v962_v51, %v191_v50  ;;  %v268_v54 = vpop.f32.mrb[1].mxu1 }
 0x25b   :  { %v269_v55 = vadd.f32 %v268_v54, %v186_v52  ;;  %v836_v54 = vlaneseq }
 0x25c   :  { %875 = vst.msk [vmem:[%s1389_s8 + $0x28] sm:$0x3] %vm68_vm2, %v274_v53  ;;  %1053 = vtanh.f32 %v274_v53 }
 0x25d   :  { %874 = vst.msk [vmem:[%s1389_s8 + $0x20] sm:$0xff] %vm66_vm1, %v269_v55  ;;  %1055 = vtanh.f32 %v269_v55 }
 0x266   :  { %v1054_v56 = vpop.eup %1053 }
 0x267   :  { %v1056_v57 = vpop.eup %1055 }
 0x268   :  { %v1010_v58 = vpack.c.bf16 %v1054_v56, %v1056_v57  ;;  %v837_v57 = vshrl.u32 %v836_v54, 7 }
 0x26a   :  { %1012 = vmatprep.subr.msk.bf16.mxu0 %vm1227_vm5, %v1010_v58  ;;  %v838_v60 = vsub.s32 0, %v837_v57 }
 0x26b   :  { %1015 = vmatpush3.bf16.msk.msra.mxu0 %vm1227_vm5, %v1010_v58 }
 0x26e   :  { %968 = vmatmul.mubr.msk.f32.vlgmr.msra.gmra.mrb[2].mxu0 %vm86_vm0, %v877_v59 }
 0x26f   :  { %981 = vmatprep.mubr.msk.f32.mxu0 %vm86_vm0, %v894_v7 }
 0x341   :  { %v969_v62 = vpop.f32.mrb[2].mxu0 }
 0x342   :  { %v379_v0 = vadd.f32 %v969_v62, %v296_v61  ;;  %v373_v1 = vpop.f32.mrb[3].mxu0  ;;  %v834_v62 = vpop.permute.xlu0 %833 }
 0x343   :  { %v374_v2 = vadd.f32 %v373_v1, %v291_v63 }
 0x344   :  { %884 = vst.msk [vmem:[%s1389_s8 + $0x38] sm:$0x3] %vm68_vm2, %v379_v0  ;;  %1057 = vtanh.f32 %v379_v0  ;;  %v839_v0 = vrot.slane %v834_v62, %v838_v60 }
 0x345   :  { %883 = vst.msk [vmem:[%s1389_s8 + $0x30] sm:$0xff] %vm66_vm1, %v374_v2  ;;  %1059 = vtanh.f32 %v374_v2 }
 0x34e   :  { %v1058_v3 = vpop.eup %1057 }
 0x34f   :  { %v1060_v4 = vpop.eup %1059 }
 0x350   :  { %v1016_v5 = vpack.c.bf16 %v1058_v3, %v1060_v4 }
 0x352   :  { %1018 = vmatprep.subr.msk.bf16.mxu1 %vm1227_vm5, %v1016_v5 }
 0x353   :  { %1021 = vmatpush3.bf16.msk.msra.mxu1 %vm1227_vm5, %v1016_v5 }
 0x356   :  { %975 = vmatmul.mubr.msk.f32.vlgmr.msra.gmra.mrb[2].mxu1 %vm86_vm0, %v886_v6 }
 0x357   :  { %988 = vmatprep.mubr.msk.f32.mxu1 %vm86_vm0, %v903_v18 }
 0x429   :  { %v976_v9 = vpop.f32.mrb[2].mxu1 }
 0x42a   :  { %v484_v11 = vadd.f32 %v976_v9, %v401_v8  ;;  %v478_v12 = vpop.f32.mrb[3].mxu1 }
 0x42b   :  { %v479_v13 = vadd.f32 %v478_v12, %v396_v10 }
 0x42c   :  { %893 = vst.msk [vmem:[%s1389_s8 + $0x48] sm:$0x3] %vm68_vm2, %v484_v11  ;;  %1061 = vtanh.f32 %v484_v11 }
 0x42d   :  { %892 = vst.msk [vmem:[%s1389_s8 + $0x40] sm:$0xff] %vm66_vm1, %v479_v13  ;;  %1063 = vtanh.f32 %v479_v13 }
 0x436   :  { %v1062_v14 = vpop.eup %1061 }
 0x437   :  { %v1064_v15 = vpop.eup %1063 }
 0x438   :  { %v1022_v16 = vpack.c.bf16 %v1062_v14, %v1064_v15 }
 0x43a   :  { %1024 = vmatprep.subr.msk.bf16.mxu0 %vm1227_vm5, %v1022_v16 }
 0x43b   :  { %1027 = vmatpush3.bf16.msk.msra.mxu0 %vm1227_vm5, %v1022_v16 }
 0x43e   :  { %982 = vmatmul.mubr.msk.f32.vlgmr.msra.gmra.mrb[4].mxu0 %vm86_vm0, %v895_v17 }
 0x43f   :  { %995 = vmatprep.mubr.msk.f32.mxu0 %vm86_vm0, %v912_v29 }
 0x511   :  { %v983_v20 = vpop.f32.mrb[4].mxu0 }
 0x512   :  { %v589_v22 = vadd.f32 %v983_v20, %v506_v19  ;;  %v583_v23 = vpop.f32.mrb[5].mxu0 }
 0x513   :  { %v584_v24 = vadd.f32 %v583_v23, %v501_v21 }
 0x514   :  { %902 = vst.msk [vmem:[%s1389_s8 + $0x58] sm:$0x3] %vm68_vm2, %v589_v22  ;;  %1065 = vtanh.f32 %v589_v22 }
 0x515   :  { %901 = vst.msk [vmem:[%s1389_s8 + $0x50] sm:$0xff] %vm66_vm1, %v584_v24  ;;  %1067 = vtanh.f32 %v584_v24 }
 0x51e   :  { %v1066_v25 = vpop.eup %1065 }
 0x51f   :  { %v1068_v26 = vpop.eup %1067 }
 0x520   :  { %v1028_v27 = vpack.c.bf16 %v1066_v25, %v1068_v26 }
 0x522   :  { %1030 = vmatprep.subr.msk.bf16.mxu1 %vm1227_vm5, %v1028_v27 }
 0x523   :  { %1033 = vmatpush3.bf16.msk.msra.mxu1 %vm1227_vm5, %v1028_v27 }
 0x526   :  { %989 = vmatmul.mubr.msk.f32.vlgmr.msra.gmra.mrb[4].mxu1 %vm86_vm0, %v904_v28 }
 0x5f9   :  { %v990_v31 = vpop.f32.mrb[4].mxu1 }
 0x5fa   :  { %v694_v33 = vadd.f32 %v990_v31, %v611_v30  ;;  %v688_v34 = vpop.f32.mrb[5].mxu1 }
 0x5fb   :  { %v689_v36 = vadd.f32 %v688_v34, %v606_v32 }
 0x5fc   :  { %911 = vst.msk [vmem:[%s1389_s8 + $0x68] sm:$0x3] %vm68_vm2, %v694_v33  ;;  %1069 = vtanh.f32 %v694_v33 }
 0x5fd   :  { %910 = vst.msk [vmem:[%s1389_s8 + $0x60] sm:$0xff] %vm66_vm1, %v689_v36  ;;  %1071 = vtanh.f32 %v689_v36 }
 0x606   :  { %v1070_v37 = vpop.eup %1069 }
 0x607   :  { %v1072_v38 = vpop.eup %1071 }
 0x608   :  { %v1034_v39 = vpack.c.bf16 %v1070_v37, %v1072_v38 }
 0x60a   :  { %1036 = vmatprep.subr.msk.bf16.mxu0 %vm1227_vm5, %v1034_v39 }
 0x60b   :  { %1039 = vmatpush3.bf16.msk.msra.mxu0 %vm1227_vm5, %v1034_v39 }
 0x60e   :  { %996 = vmatmul.mubr.msk.f32.vlgmr.msra.gmra.mrb[6].mxu0 %vm86_vm0, %v913_v40 }
 0x6e1   :  { %v997_v42 = vpop.f32.mrb[6].mxu0 }
 0x6e2   :  { %v799_v44 = vadd.f32 %v997_v42, %v716_v41  ;;  %v793_v45 = vpop.f32.mrb[7].mxu0 }
 0x6e3   :  { %v794_v46 = vadd.f32 %v793_v45, %v711_v43 }
 0x6e4   :  { %920 = vst.msk [vmem:[%s1389_s8 + $0x78] sm:$0x3] %vm68_vm2, %v799_v44  ;;  %1073 = vtanh.f32 %v799_v44 }
 0x6e5   :  { %919 = vst.msk [vmem:[%s1389_s8 + $0x70] sm:$0xff] %vm66_vm1, %v794_v46  ;;  %1075 = vtanh.f32 %v794_v46  ;;  %s849_s8 = sshll.u32 %s1103_s3, 4  ;;  %s850_s8 = int_to_ptr.vmem [resolvable:$true] %s849_s8 }
 0x6e6   :  { %s1077_s5 = scalar_lea.vmem %s850_s8, 16  ;;  %s1081_s24 = scalar_lea.vmem %s850_s8, 32 }
 0x6e7   :  { %p1078_p0 = scmp.ne.s32.totalorder %s850_s8, %s1077_s5  ;;  %p1082_p1 = scmp.lt.s32.totalorder %s850_s8, %s850_s8 }
 0x6e8   :  { %p1083_p2 = scmp.lt.s32.totalorder %s1081_s24, %s1077_s5 }
 0x6ea   :  { %p1084_p3 = por %p1083_p2, %p1082_p1 }
 0x6ec   :  { %p1085_p4 = pnand %p1084_p3, %p1078_p0 }
 0x6ee   :  { %v1074_v35 = vpop.eup %1073 }
 0x6ef   :  { %v1076_v48 = vpop.eup %1075  ;;  %v820_v50 = vmul.f32 %v1074_v35, %v817_v47 }
 0x6f0   :  { %v819_v51 = vmul.f32 %v1076_v48, %v812_v49 }
 0x6f1   :  { %v822_v52 = vsel %vm68_vm2, %v820_v50, 0.0 }
 0x6f2   :  { %v821_v53 = vsel %vm66_vm1, %v819_v51, 0.0 }
 0x6f3   :  { %v823_v55 = vadd.f32 %v822_v52, %v821_v53 }
 0x6f5   :  { %v824_v56 = vrot.slane %v823_v55, 4 }
 0x6f7   :  { %v825_v58 = vadd.f32 %v824_v56, %v823_v55 }
 0x6f9   :  { %v826_v59 = vrot.slane %v825_v58, 2 }
 0x6fb   :  { %v827_v61 = vadd.f32 %v826_v59, %v825_v58 }
 0x6fd   :  { %v828_v63 = vrot.slane %v827_v61, 1 }
 0x6ff   :  { %v829_v1 = vadd.f32 %v828_v63, %v827_v61 }
 0x701   :  { %v840_v2 = vadd.f32 %v839_v0, %v829_v1 }
 0x703   :  { %842 = vst.msk [vmem:[#allocation3] sm:$0x1] %vm841_vm6, %v840_v2 }
 0x704   :  { %1088 = shalt.err (!%p1085_p4)
}
 0x705   :  { %s1089_s26 = scalar_lea.hbm %s1388_s7, 16 }
 0x706   :  { %p1090_p5 = scmp.ne.s32.totalorder %s1388_s7, %s1089_s26  ;;  %p1093_p6 = scmp.lt.u32.totalorder %s1089_s26, %s1388_s7 }
 0x708   :  { %p1095_p7 = pnand %p1093_p6, %p1090_p5 }
 0x70a   :  { %1098 = shalt.err (!%p1095_p7)
}
 0x70b   :  { %852 = dma.vmem_to_hbm [thread:$0]  %s850_s8, 16, %s1388_s7, [#allocation4]  }
 0x70c   :  { %1099 = dma.done.wait [#allocation4], 16  }
 0x70d   :  { %1100 = vsyncadd [#allocation4], 4294967280 }
 0x70e   :  { %860 = vsyncpa [#allocation4], 1 }

</bundles_post_ra>
